<compile_context>
chip_gen: v7x
topology: tpu7x:2x2x1
jax: 0.10.0
libtpu: 0.0.40
codegen_flags: <defaults>
</compile_context>

<pallas_src>
import jax
import jax.numpy as jnp
from jax import lax
from jax.experimental import pallas as pl
from jax.experimental.pallas import tpu as pltpu


# ---------------------------------------------------------------------------
# Path A: small table -> VMEM-resident gather (no DMA descriptors at all).
# ---------------------------------------------------------------------------
def _clip_embedding_vmem_kernel(tok_ref, emb_ref, pos_ref, out_ref):
    # tok_ref : SMEM (B, S) int32   (scalar-prefetched)
    # emb_ref : VMEM (V, D)         (whole table resident)
    # pos_ref : VMEM (S, D)
    # out_ref : VMEM (1, S, D)      one batch row per grid step
    b = pl.program_id(0)
    S = pos_ref.shape[0]
    V = emb_ref.shape[0]

    def body(s, carry):
        tok = jnp.clip(tok_ref[b, s], 0, V - 1)      # OOB ids are unchecked on TPU
        row = emb_ref[pl.ds(tok, 1), :]              # (1, D) dynamic-slice gather
        out_ref[0, pl.ds(s, 1), :] = (row + pos_ref[pl.ds(s, 1), :]).astype(out_ref.dtype)
        return carry

    lax.fori_loop(0, S, body, 0, unroll=min(S, 8))


def _clip_embedding_vmem(tokens, token_embedding, position_embedding):
    B, S = tokens.shape
    V, D = token_embedding.shape

    grid_spec = pltpu.PrefetchScalarGridSpec(
        num_scalar_prefetch=1,                             # tokens -> SMEM
        grid=(B,),
        in_specs=[
            pl.BlockSpec((V, D), lambda b, tok: (0, 0)),   # whole table in VMEM
            pl.BlockSpec((S, D), lambda b, tok: (0, 0)),   # position table in VMEM
        ],
        out_specs=pl.BlockSpec((1, S, D), lambda b, tok: (b, 0, 0)),
    )
    return pl.pallas_call(
        _clip_embedding_vmem_kernel,
        out_shape=jax.ShapeDtypeStruct((B, S, D), token_embedding.dtype),
        grid_spec=grid_spec,
        compiler_params=pltpu.CompilerParams(dimension_semantics=("parallel",)),
    )(tokens, token_embedding, position_embedding)


# ---------------------------------------------------------------------------
# Path B: large table stays in HBM; manual row-gather DMAs per grid step.
# ---------------------------------------------------------------------------
def _clip_embedding_dma_kernel(tok_ref, emb_hbm, pos_ref, out_ref, copy_sem):
    # tok_ref  : SMEM (B, S) int32        (scalar-prefetched)
    # emb_hbm  : HBM  (V, D)              (memory_space=pl.ANY; not auto-DMA'd)
    # pos_ref  : VMEM (S, D)
    # out_ref  : VMEM (TB, S, D)          TB batch rows per grid step
    # copy_sem : single shared DMA semaphore
    i = pl.program_id(0)
    TB, S, _ = out_ref.shape
    V = emb_hbm.shape[0]

    # 1) Issue all TB*S row-gather DMAs for this step.  They share one semaphore
    #    and land directly in the output block, so they all run concurrently.
    def rows(tb, carry):
        def cols(s, c):
            tok = jnp.clip(tok_ref[i * TB + tb, s], 0, V - 1)   # OOB unchecked on TPU
            pltpu.make_async_copy(
                emb_hbm.at[pl.ds(tok, 1)],           # (1, D) row in HBM
                out_ref.at[tb, pl.ds(s, 1), :],      # (1, D) row of the output block
                copy_sem,
            ).start()
            return c
        return lax.fori_loop(0, S, cols, carry, unroll=min(S, 8))

    lax.fori_loop(0, TB, rows, 0)

    # 2) Aggregate waits on the shared semaphore: TB waits of (S, D) bytes each
    #    consume exactly the TB*S row transfers issued above (no per-row waits,
    #    no per-row descriptor reconstruction).
    def waits(tb, carry):
        pltpu.make_async_copy(
            emb_hbm.at[pl.ds(0, S)],                 # size-only source for aggregate wait
            out_ref.at[tb],
            copy_sem,
        ).wait()
        return carry

    lax.fori_loop(0, TB, waits, 0)

    # 3) One vectorized position add, in place; the lane-dense (TB, S, D) slab is
    #    then written back by the normal output pipeline.
    out_ref[...] = (out_ref[...] + pos_ref[...][None, :, :]).astype(out_ref.dtype)


def _pick_rows_per_step(batch, cap):
    """Largest divisor of `batch` <= cap, keeping the grid >= 2 steps when possible
    so v7x's two TensorCores both get work (no-op on v5e/v6e)."""
    if batch <= 1:
        return 1
    limit = max(1, min(cap, batch // 2))
    rows = 1
    for cand in range(1, limit + 1):
        if batch % cand == 0:
            rows = cand
    return rows


def _clip_embedding_dma(tokens, token_embedding, position_embedding, rows_cap):
    B, S = tokens.shape
    V, D = token_embedding.shape
    # The aggregate-wait descriptor slices emb[0:S]; always true for embeddings.
    assert S <= V, "sequence length must not exceed vocab size for the DMA path"
    # TODO(synk): u32-pack sub-32-bit (bf16/int8/fp8) table rows for the gather DMAs
    # so concurrent single-row copies never share packed 32-bit sublane words.
    TB = _pick_rows_per_step(B, rows_cap)

    grid_spec = pltpu.PrefetchScalarGridSpec(
        num_scalar_prefetch=1,                             # tokens -> SMEM
        grid=(B // TB,),
        in_specs=[
            pl.BlockSpec(memory_space=pl.ANY),             # (V, D) table stays in HBM
            pl.BlockSpec((S, D), lambda i, tok: (0, 0)),   # pos table resident in VMEM
        ],
        # TB full (S, D) slabs per step -> unmasked lane-dense writeback.
        out_specs=pl.BlockSpec((TB, S, D), lambda i, tok: (i, 0, 0)),
        scratch_shapes=[pltpu.SemaphoreType.DMA(())],      # one shared gather semaphore
    )
    return pl.pallas_call(
        _clip_embedding_dma_kernel,
        out_shape=jax.ShapeDtypeStruct((B, S, D), token_embedding.dtype),
        grid_spec=grid_spec,
        compiler_params=pltpu.CompilerParams(dimension_semantics=("parallel",)),
    )(tokens, token_embedding, position_embedding)


# ---------------------------------------------------------------------------
# Public wrapper (CLIPEmbedding.forward).
# ---------------------------------------------------------------------------
def clip_embedding(tokens, token_embedding, position_embedding, *,
                   rows_per_step=8,
                   vmem_table_bytes_max=4 * 1024 * 1024,
                   force_dma_gather=False):
    """token_embedding[tokens] + position_embedding, as in the PyTorch module."""
    B, S = tokens.shape
    V, D = token_embedding.shape
    assert position_embedding.shape == (S, D)
    tokens = tokens.astype(jnp.int32)
    out_dtype = token_embedding.dtype
    position_embedding = position_embedding.astype(out_dtype)

    table_bytes = V * D * jnp.dtype(out_dtype).itemsize
    if (not force_dma_gather) and table_bytes <= vmem_table_bytes_max:
        return _clip_embedding_vmem(tokens, token_embedding, position_embedding)
    return _clip_embedding_dma(tokens, token_embedding, position_embedding, rows_per_step)


if __name__ == "__main__":
    key = jax.random.PRNGKey(0)
    k_tok1, k_emb1, k_pos1, k_tok2, k_emb2, k_pos2 = jax.random.split(key, 6)

    # --- Path A: small table -> VMEM-resident gather ------------------------
    vocab1, dim1, seq1, batch1 = 64, 128, 8, 2
    emb1 = jax.random.normal(k_emb1, (vocab1, dim1), dtype=jnp.float32)
    # Module initializes position_embedding to zeros; use small random values so
    # the position-add path is actually tested.
    pos1 = 0.1 * jax.random.normal(k_pos1, (seq1, dim1), dtype=jnp.float32)
    tok1 = jax.random.randint(k_tok1, (batch1, seq1), 0, vocab1, dtype=jnp.int32)

    out1 = jax.block_until_ready(clip_embedding(tok1, emb1, pos1))
    ref1 = emb1[tok1] + pos1[None, :, :]
    assert out1.shape == (batch1, seq1, dim1)
    assert jnp.allclose(out1, ref1, atol=1e-6), "VMEM-path mismatch vs reference"

    # --- Path B: HBM table + manual DMA row gather (forced at small shapes) --
    vocab2, dim2, seq2, batch2 = 512, 128, 8, 4      # batch2=4 -> TB=2, grid=(2,)
    emb2 = jax.random.normal(k_emb2, (vocab2, dim2), dtype=jnp.float32)
    pos2 = 0.1 * jax.random.normal(k_pos2, (seq2, dim2), dtype=jnp.float32)
    tok2 = jax.random.randint(k_tok2, (batch2, seq2), 0, vocab2, dtype=jnp.int32)

    out2 = jax.block_until_ready(
        clip_embedding(tok2, emb2, pos2, force_dma_gather=True))
    ref2 = emb2[tok2] + pos2[None, :, :]
    assert out2.shape == (batch2, seq2, dim2)
    assert jnp.allclose(out2, ref2, atol=1e-6), "DMA-path mismatch vs reference"

    print("KERNEL_OK")
</pallas_src>

<mosaic_0001>
module attributes {stable_mosaic.version = 11 : i64} {
  func.func @_clip_embedding_vmem_kernel(%arg0: i32, %arg1: memref<2x8xi32, #tpu.memory_space<smem>>, %arg2: memref<64x128xf32, #tpu.memory_space<vmem>>, %arg3: memref<8x128xf32, #tpu.memory_space<vmem>>, %arg4: memref<1x8x128xf32, #tpu.memory_space<vmem>>) attributes {dimension_semantics = [#tpu.dimension_semantics<parallel>], iteration_bounds = array<i64: 2>, scalar_prefetch = 1 : i64, scratch_operands = 0 : i64, tpu.core_type = #tpu.core_type<tc>, window_params = [{pipeline_mode = #tpu.pipeline_mode<synchronous>, transform_indices = @transform_0, window_bounds = array<i64: 64, 128>}, {pipeline_mode = #tpu.pipeline_mode<synchronous>, transform_indices = @transform_1, window_bounds = array<i64: 8, 128>}, {transform_indices = @transform_2, window_bounds = array<i64: 1, 8, 128>}]} {
    %c0_i32 = arith.constant 0 : i32
    %0 = arith.index_cast %arg0 : i32 to index
    %1 = arith.index_cast %c0_i32 : i32 to index
    %2 = memref.load %arg1[%0, %1] : memref<2x8xi32, #tpu.memory_space<smem>>
    %c0_i32_0 = arith.constant 0 : i32
    %c63_i32 = arith.constant 63 : i32
    %3 = arith.maxsi %c0_i32_0, %2 : i32
    %4 = arith.minsi %c63_i32, %3 : i32
    %5 = arith.index_cast %4 : i32 to index
    %c0 = arith.constant 0 : index
    %6 = vector.load %arg2[%5, %c0] : memref<64x128xf32, #tpu.memory_space<vmem>>, vector<1x128xf32>
    %7 = arith.index_cast %c0_i32 : i32 to index
    %c0_1 = arith.constant 0 : index
    %8 = vector.load %arg3[%7, %c0_1] : memref<8x128xf32, #tpu.memory_space<vmem>>, vector<1x128xf32>
    %9 = arith.addf %6, %8 : vector<1x128xf32>
    %c0_2 = arith.constant 0 : index
    %10 = arith.index_cast %c0_i32 : i32 to index
    %c0_3 = arith.constant 0 : index
    %11 = vector.load %arg4[%c0_2, %10, %c0_3] : memref<1x8x128xf32, #tpu.memory_space<vmem>>, vector<1x1x128xf32>
    %12 = vector.shape_cast %11 : vector<1x1x128xf32> to vector<1x128xf32>
    %13 = vector.shape_cast %9 : vector<1x128xf32> to vector<1x1x128xf32>
    tpu.vector_store %arg4[%c0_2, %10, %c0_3], %13 {strides = array<i32>} : memref<1x8x128xf32, #tpu.memory_space<vmem>>, vector<1x1x128xf32>,
    %c1_i32 = arith.constant 1 : i32
    %14 = arith.index_cast %arg0 : i32 to index
    %15 = arith.index_cast %c1_i32 : i32 to index
    %16 = memref.load %arg1[%14, %15] : memref<2x8xi32, #tpu.memory_space<smem>>
    %c0_i32_4 = arith.constant 0 : i32
    %c63_i32_5 = arith.constant 63 : i32
    %17 = arith.maxsi %c0_i32_4, %16 : i32
    %18 = arith.minsi %c63_i32_5, %17 : i32
    %19 = arith.index_cast %18 : i32 to index
    %c0_6 = arith.constant 0 : index
    %20 = vector.load %arg2[%19, %c0_6] : memref<64x128xf32, #tpu.memory_space<vmem>>, vector<1x128xf32>
    %21 = arith.index_cast %c1_i32 : i32 to index
    %c0_7 = arith.constant 0 : index
    %22 = vector.load %arg3[%21, %c0_7] : memref<8x128xf32, #tpu.memory_space<vmem>>, vector<1x128xf32>
    %23 = arith.addf %20, %22 : vector<1x128xf32>
    %c0_8 = arith.constant 0 : index
    %24 = arith.index_cast %c1_i32 : i32 to index
    %c0_9 = arith.constant 0 : index
    %25 = vector.load %arg4[%c0_8, %24, %c0_9] : memref<1x8x128xf32, #tpu.memory_space<vmem>>, vector<1x1x128xf32>
    %26 = vector.shape_cast %25 : vector<1x1x128xf32> to vector<1x128xf32>
    %27 = vector.shape_cast %23 : vector<1x128xf32> to vector<1x1x128xf32>
    tpu.vector_store %arg4[%c0_8, %24, %c0_9], %27 {strides = array<i32>} : memref<1x8x128xf32, #tpu.memory_space<vmem>>, vector<1x1x128xf32>,
    %c2_i32 = arith.constant 2 : i32
    %28 = arith.index_cast %arg0 : i32 to index
    %29 = arith.index_cast %c2_i32 : i32 to index
    %30 = memref.load %arg1[%28, %29] : memref<2x8xi32, #tpu.memory_space<smem>>
    %c0_i32_10 = arith.constant 0 : i32
    %c63_i32_11 = arith.constant 63 : i32
    %31 = arith.maxsi %c0_i32_10, %30 : i32
    %32 = arith.minsi %c63_i32_11, %31 : i32
    %33 = arith.index_cast %32 : i32 to index
    %c0_12 = arith.constant 0 : index
    %34 = vector.load %arg2[%33, %c0_12] : memref<64x128xf32, #tpu.memory_space<vmem>>, vector<1x128xf32>
    %35 = arith.index_cast %c2_i32 : i32 to index
    %c0_13 = arith.constant 0 : index
    %36 = vector.load %arg3[%35, %c0_13] : memref<8x128xf32, #tpu.memory_space<vmem>>, vector<1x128xf32>
    %37 = arith.addf %34, %36 : vector<1x128xf32>
    %c0_14 = arith.constant 0 : index
    %38 = arith.index_cast %c2_i32 : i32 to index
    %c0_15 = arith.constant 0 : index
    %39 = vector.load %arg4[%c0_14, %38, %c0_15] : memref<1x8x128xf32, #tpu.memory_space<vmem>>, vector<1x1x128xf32>
    %40 = vector.shape_cast %39 : vector<1x1x128xf32> to vector<1x128xf32>
    %41 = vector.shape_cast %37 : vector<1x128xf32> to vector<1x1x128xf32>
    tpu.vector_store %arg4[%c0_14, %38, %c0_15], %41 {strides = array<i32>} : memref<1x8x128xf32, #tpu.memory_space<vmem>>, vector<1x1x128xf32>,
    %c3_i32 = arith.constant 3 : i32
    %42 = arith.index_cast %arg0 : i32 to index
    %43 = arith.index_cast %c3_i32 : i32 to index
    %44 = memref.load %arg1[%42, %43] : memref<2x8xi32, #tpu.memory_space<smem>>
    %c0_i32_16 = arith.constant 0 : i32
    %c63_i32_17 = arith.constant 63 : i32
    %45 = arith.maxsi %c0_i32_16, %44 : i32
    %46 = arith.minsi %c63_i32_17, %45 : i32
    %47 = arith.index_cast %46 : i32 to index
    %c0_18 = arith.constant 0 : index
    %48 = vector.load %arg2[%47, %c0_18] : memref<64x128xf32, #tpu.memory_space<vmem>>, vector<1x128xf32>
    %49 = arith.index_cast %c3_i32 : i32 to index
    %c0_19 = arith.constant 0 : index
    %50 = vector.load %arg3[%49, %c0_19] : memref<8x128xf32, #tpu.memory_space<vmem>>, vector<1x128xf32>
    %51 = arith.addf %48, %50 : vector<1x128xf32>
    %c0_20 = arith.constant 0 : index
    %52 = arith.index_cast %c3_i32 : i32 to index
    %c0_21 = arith.constant 0 : index
    %53 = vector.load %arg4[%c0_20, %52, %c0_21] : memref<1x8x128xf32, #tpu.memory_space<vmem>>, vector<1x1x128xf32>
    %54 = vector.shape_cast %53 : vector<1x1x128xf32> to vector<1x128xf32>
    %55 = vector.shape_cast %51 : vector<1x128xf32> to vector<1x1x128xf32>
    tpu.vector_store %arg4[%c0_20, %52, %c0_21], %55 {strides = array<i32>} : memref<1x8x128xf32, #tpu.memory_space<vmem>>, vector<1x1x128xf32>,
    %c4_i32 = arith.constant 4 : i32
    %56 = arith.index_cast %arg0 : i32 to index
    %57 = arith.index_cast %c4_i32 : i32 to index
    %58 = memref.load %arg1[%56, %57] : memref<2x8xi32, #tpu.memory_space<smem>>
    %c0_i32_22 = arith.constant 0 : i32
    %c63_i32_23 = arith.constant 63 : i32
    %59 = arith.maxsi %c0_i32_22, %58 : i32
    %60 = arith.minsi %c63_i32_23, %59 : i32
    %61 = arith.index_cast %60 : i32 to index
    %c0_24 = arith.constant 0 : index
    %62 = vector.load %arg2[%61, %c0_24] : memref<64x128xf32, #tpu.memory_space<vmem>>, vector<1x128xf32>
    %63 = arith.index_cast %c4_i32 : i32 to index
    %c0_25 = arith.constant 0 : index
    %64 = vector.load %arg3[%63, %c0_25] : memref<8x128xf32, #tpu.memory_space<vmem>>, vector<1x128xf32>
    %65 = arith.addf %62, %64 : vector<1x128xf32>
    %c0_26 = arith.constant 0 : index
    %66 = arith.index_cast %c4_i32 : i32 to index
    %c0_27 = arith.constant 0 : index
    %67 = vector.load %arg4[%c0_26, %66, %c0_27] : memref<1x8x128xf32, #tpu.memory_space<vmem>>, vector<1x1x128xf32>
    %68 = vector.shape_cast %67 : vector<1x1x128xf32> to vector<1x128xf32>
    %69 = vector.shape_cast %65 : vector<1x128xf32> to vector<1x1x128xf32>
    tpu.vector_store %arg4[%c0_26, %66, %c0_27], %69 {strides = array<i32>} : memref<1x8x128xf32, #tpu.memory_space<vmem>>, vector<1x1x128xf32>,
    %c5_i32 = arith.constant 5 : i32
    %70 = arith.index_cast %arg0 : i32 to index
    %71 = arith.index_cast %c5_i32 : i32 to index
    %72 = memref.load %arg1[%70, %71] : memref<2x8xi32, #tpu.memory_space<smem>>
    %c0_i32_28 = arith.constant 0 : i32
    %c63_i32_29 = arith.constant 63 : i32
    %73 = arith.maxsi %c0_i32_28, %72 : i32
    %74 = arith.minsi %c63_i32_29, %73 : i32
    %75 = arith.index_cast %74 : i32 to index
    %c0_30 = arith.constant 0 : index
    %76 = vector.load %arg2[%75, %c0_30] : memref<64x128xf32, #tpu.memory_space<vmem>>, vector<1x128xf32>
    %77 = arith.index_cast %c5_i32 : i32 to index
    %c0_31 = arith.constant 0 : index
    %78 = vector.load %arg3[%77, %c0_31] : memref<8x128xf32, #tpu.memory_space<vmem>>, vector<1x128xf32>
    %79 = arith.addf %76, %78 : vector<1x128xf32>
    %c0_32 = arith.constant 0 : index
    %80 = arith.index_cast %c5_i32 : i32 to index
    %c0_33 = arith.constant 0 : index
    %81 = vector.load %arg4[%c0_32, %80, %c0_33] : memref<1x8x128xf32, #tpu.memory_space<vmem>>, vector<1x1x128xf32>
    %82 = vector.shape_cast %81 : vector<1x1x128xf32> to vector<1x128xf32>
    %83 = vector.shape_cast %79 : vector<1x128xf32> to vector<1x1x128xf32>
    tpu.vector_store %arg4[%c0_32, %80, %c0_33], %83 {strides = array<i32>} : memref<1x8x128xf32, #tpu.memory_space<vmem>>, vector<1x1x128xf32>,
    %c6_i32 = arith.constant 6 : i32
    %84 = arith.index_cast %arg0 : i32 to index
    %85 = arith.index_cast %c6_i32 : i32 to index
    %86 = memref.load %arg1[%84, %85] : memref<2x8xi32, #tpu.memory_space<smem>>
    %c0_i32_34 = arith.constant 0 : i32
    %c63_i32_35 = arith.constant 63 : i32
    %87 = arith.maxsi %c0_i32_34, %86 : i32
    %88 = arith.minsi %c63_i32_35, %87 : i32
    %89 = arith.index_cast %88 : i32 to index
    %c0_36 = arith.constant 0 : index
    %90 = vector.load %arg2[%89, %c0_36] : memref<64x128xf32, #tpu.memory_space<vmem>>, vector<1x128xf32>
    %91 = arith.index_cast %c6_i32 : i32 to index
    %c0_37 = arith.constant 0 : index
    %92 = vector.load %arg3[%91, %c0_37] : memref<8x128xf32, #tpu.memory_space<vmem>>, vector<1x128xf32>
    %93 = arith.addf %90, %92 : vector<1x128xf32>
    %c0_38 = arith.constant 0 : index
    %94 = arith.index_cast %c6_i32 : i32 to index
    %c0_39 = arith.constant 0 : index
    %95 = vector.load %arg4[%c0_38, %94, %c0_39] : memref<1x8x128xf32, #tpu.memory_space<vmem>>, vector<1x1x128xf32>
    %96 = vector.shape_cast %95 : vector<1x1x128xf32> to vector<1x128xf32>
    %97 = vector.shape_cast %93 : vector<1x128xf32> to vector<1x1x128xf32>
    tpu.vector_store %arg4[%c0_38, %94, %c0_39], %97 {strides = array<i32>} : memref<1x8x128xf32, #tpu.memory_space<vmem>>, vector<1x1x128xf32>,
    %c7_i32 = arith.constant 7 : i32
    %98 = arith.index_cast %arg0 : i32 to index
    %99 = arith.index_cast %c7_i32 : i32 to index
    %100 = memref.load %arg1[%98, %99] : memref<2x8xi32, #tpu.memory_space<smem>>
    %c0_i32_40 = arith.constant 0 : i32
    %c63_i32_41 = arith.constant 63 : i32
    %101 = arith.maxsi %c0_i32_40, %100 : i32
    %102 = arith.minsi %c63_i32_41, %101 : i32
    %103 = arith.index_cast %102 : i32 to index
    %c0_42 = arith.constant 0 : index
    %104 = vector.load %arg2[%103, %c0_42] : memref<64x128xf32, #tpu.memory_space<vmem>>, vector<1x128xf32>
    %105 = arith.index_cast %c7_i32 : i32 to index
    %c0_43 = arith.constant 0 : index
    %106 = vector.load %arg3[%105, %c0_43] : memref<8x128xf32, #tpu.memory_space<vmem>>, vector<1x128xf32>
    %107 = arith.addf %104, %106 : vector<1x128xf32>
    %c0_44 = arith.constant 0 : index
    %108 = arith.index_cast %c7_i32 : i32 to index
    %c0_45 = arith.constant 0 : index
    %109 = vector.load %arg4[%c0_44, %108, %c0_45] : memref<1x8x128xf32, #tpu.memory_space<vmem>>, vector<1x1x128xf32>
    %110 = vector.shape_cast %109 : vector<1x1x128xf32> to vector<1x128xf32>
    %111 = vector.shape_cast %107 : vector<1x128xf32> to vector<1x1x128xf32>
    tpu.vector_store %arg4[%c0_44, %108, %c0_45], %111 {strides = array<i32>} : memref<1x8x128xf32, #tpu.memory_space<vmem>>, vector<1x1x128xf32>,
    %c8_i32 = arith.constant 8 : i32
    return
  }
  func.func @transform_0(%arg0: i32, %arg1: memref<2x8xi32, #tpu.memory_space<smem>>) -> (i32, i32) {
    %c0_i32 = arith.constant 0 : i32
    %c0_i32_0 = arith.constant 0 : i32
    %c0_i32_1 = arith.constant 0 : i32
    return %c0_i32, %c0_i32_0 : i32, i32
  }
  func.func @transform_1(%arg0: i32, %arg1: memref<2x8xi32, #tpu.memory_space<smem>>) -> (i32, i32) {
    %c0_i32 = arith.constant 0 : i32
    %c0_i32_0 = arith.constant 0 : i32
    %c0_i32_1 = arith.constant 0 : i32
    return %c0_i32, %c0_i32_0 : i32, i32
  }
  func.func @transform_2(%arg0: i32, %arg1: memref<2x8xi32, #tpu.memory_space<smem>>) -> (i32, i32, i32) {
    %c0_i32 = arith.constant 0 : i32
    %c0_i32_0 = arith.constant 0 : i32
    %c0_i32_1 = arith.constant 0 : i32
    return %arg0, %c0_i32, %c0_i32_0 : i32, i32, i32
  }
}

</mosaic_0001>

<bundles_post_ra>
// kernel: tpu_custom_call.1
= control target key start
LH: loop header
LB: loop body
LE: loop exit
PB: predicated region body
PF: predicated region fallthrough
CT: control target
= control target key end

     0   :  { %s847_s0 = inlined_call_operand.hbm [shape: s32[2,8], index: 0, kind: input, shape index: {}]   ;;  %s848_s1 = inlined_call_operand.hbm [shape: f32[64,128], index: 1, kind: input, shape index: {}]   ;;  %s849_s2 = inlined_call_operand.hbm [shape: f32[8,128], index: 2, kind: input, shape index: {}]   ;;  %s850_s3 = inlined_call_operand.hbm [shape: f32[2,8,128], index: 3, kind: output, shape index: {}]  }
   0x1   :  { %s466_s14 = scalar_lea.hbm %s847_s0, 32 }
   0x2   :  { %p467_p0 = scmp.ne.s32.totalorder %s847_s0, %s466_s14  ;;  %p470_p1 = scmp.lt.u32.totalorder %s466_s14, %s847_s0 }
   0x4   :  { %p472_p2 = pnand %p470_p1, %p467_p0 }
   0x6   :  { %475 = shalt.err (!%p472_p2)  }
   0x7   :  { %s606_s19 = smov [#allocation3]  }
   0x8   :  { %9 = dma.hbm_to_smem %s847_s0, 32, %s606_s19, [#allocation2] }
   0x9   :  { %576 = dma.done.wait [#allocation2], 32 }
   0xa   :  { %577 = vsyncadd [#allocation2], 4294967264 }
   0xb   :  { %11 = sfence }
   0xc   :  { %12 = vsyncpa [#allocation5], 0 }
   0xd   :  { %13 = vsyncpa [#allocation8], 0 }
   0xe   :  { %14 = vsyncpa [#allocation6], 0 }
   0xf   :  { %16 = vsyncpa [#allocation6 + $0x1], 0  ;;  %s644_s22 = smov 0   ;;  %s646_s23 = smov 0  }
  0x10   :  { %s648_s24 = smov 0   ;;  %s650_s25 = smov 0  }
  0x11 LB: > { %s665_s0 = sadd.s32 4294967295, %s604_s25   ;;  %s334_s26 = sadd.s32 4294967294, %s604_s25   ;;  %s604_s25 = sphi %s650_s25, %s868_s25   ;;  %s600_s24 = sphi %s648_s24, %s867_s24   ;;  %s596_s23 = sphi %s646_s23, %s866_s23   ;;  %s592_s22 = sphi %s644_s22, %s865_s22  }
  0x12   : > { %s669_s27 = sadd.s32 1, %s604_s25   ;;  %s71_s28 = sadd.s32 1, %s600_s24 }
  0x13   : > { %s68_s29 = ssub.s32 %s604_s25, %s669_s27  ;;  %p81_p3 = scmp.ne.s32.totalorder %s600_s24, %s596_s23 }
  0x14   : > { %p69_p4 = scmp.eq.s32.totalorder %s68_s29, 0  ;;  %p82_p5 = scmp.eq.s32.totalorder %s665_s0, 1 }
  0x15   : > { %p87_p6 = scmp.ne.s32.totalorder %s596_s23, %s592_s22  ;;  %p88_p7 = scmp.eq.s32.totalorder %s334_s26, 1 }
  0x16   : > { %s680_s30 = scalar_select %p69_p4, %s600_s24, %s71_s28  }
  0x17   : > { %p682_p8 = por %p82_p5, %p81_p3  ;;  %p686_p9 = por %p88_p7, %p87_p6 }
  0x18   : > { %p335_p10 = scmp.ge.s32.totalorder %s604_s25, 1  ;;  %p95_p11 = scmp.lt.s32.totalorder %s604_s25, 3 }
  0x19   : > { %s854_s4 = scalar_select %p682_p8, 1, 0 }
  0x1a   : > { %s855_s5 = scalar_select %p686_p9, 1, 0 }
  0x1b   : > { %p851_p12 = scmp.eq.s32.totalorder %s665_s0, 0  ;;  %p693_p13 = pnand %p335_p10, %p95_p11 }
  0x1c   : > { %s607_s7 = smov [#allocation4]   ;;  %s608_s10 = smov [#allocation7]  }
  0x1d   : > { %s856_s6 = scalar_select %p693_p13, 1, 0 }
  0x1e   : > { %s107_s8 = sshll.u32 %s607_s7, 4  ;;  %p413_p0 = pneg %p693_p13  ;;  %s108_s8 = int_to_ptr.vmem [resolvable:$true] %s107_s8 }
  0x1f   : > { %s121_s11 = sshll.u32 %s608_s10, 4  ;;  %s476_s14 = scalar_lea.hbm %s848_s1, 1024  ;;  %s705_s11 = int_to_ptr.vmem [resolvable:$true] %s121_s11 }
  0x20   : > { %p701_p1 = pnand %p851_p12, %p413_p0  ;;  %p477_p2 = scmp.ne.s32.totalorder %s848_s1, %s476_s14 }
  0x21   : > { %p483_p6 = scmp.lt.u32.totalorder %s476_s14, %s848_s1 }
  0x22   : > { %p478_p3 = pneg %p701_p1 }
  0x24   : > { %p479_p4 = pnand %p478_p3, %p477_p2 }
  0x26   : > { %p480_p5 = pneg %p479_p4 }
  0x28   : > { %p485_p7 = pnand %p483_p6, %p480_p5 }
  0x2a   : > { %488 = shalt.err (!%p485_p7)
}
  0x2b   : > { %s489_s19 = scalar_lea.vmem %s108_s8, 1024  ;;  %p497_p12 = scmp.lt.s32.totalorder %s108_s8, %s108_s8 }
  0x2c   : > { %p490_p10 = scmp.ne.s32.totalorder %s108_s8, %s489_s19  ;;  %p498_p9 = scmp.lt.s32.totalorder %s489_s19, %s489_s19 }
  0x2e   : > { %p492_p11 = pnand %p490_p10, %p478_p3  ;;  %p499_p8 = por %p498_p9, %p497_p12 }
  0x30   : > { %p493_p0 = pneg %p492_p11 }
  0x32   : > { %p500_p13 = pnand %p499_p8, %p493_p0 }
  0x34   : > { %503 = shalt.err (!%p500_p13)
}
  0x35   : > { %s609_s20 = smov 128   ;;  %s610_s21 = smov 8  }
  0x36   : > { %416 = dma.hbm_to_vmem [thread:$0]  (!%p701_p1), %s848_s1, 1024, %s108_s8, [#allocation5], %s609_s20, %s609_s20, %s610_s21  }
  0x37   : > { %s504_s10 = scalar_lea.hbm %s849_s2, 128 }
  0x38   : > { %p505_p2 = scmp.ne.s32.totalorder %s849_s2, %s504_s10  ;;  %p511_p12 = scmp.lt.u32.totalorder %s504_s10, %s849_s2 }
  0x3a   : > { %p507_p8 = pnand %p505_p2, %p478_p3 }
  0x3c   : > { %p508_p9 = pneg %p507_p8 }
  0x3e   : > { %p513_p13 = pnand %p511_p12, %p508_p9 }
  0x40   : > { %516 = shalt.err (!%p513_p13)
}
  0x41   : > { %s517_s8 = scalar_lea.vmem %s705_s11, 128  ;;  %p525_p7 = scmp.lt.s32.totalorder %s705_s11, %s705_s11 }
  0x42   : > { %p518_p4 = scmp.ne.s32.totalorder %s705_s11, %s517_s8  ;;  %p526_p10 = scmp.lt.s32.totalorder %s517_s8, %s517_s8 }
  0x44   : > { %p520_p5 = pnand %p518_p4, %p478_p3  ;;  %p527_p11 = por %p526_p10, %p525_p7 }
  0x46   : > { %p521_p6 = pneg %p520_p5 }
  0x48   : > { %p528_p0 = pnand %p527_p11, %p521_p6 }
  0x4a   : > { %531 = shalt.err (!%p528_p0)
}
  0x4b   : > { %419 = dma.hbm_to_vmem [thread:$0]  (!%p701_p1), %s849_s2, 128, %s705_s11, [#allocation8]  }
  0x4c   : > { %p858_p2 = scmp.ne.s32.totalorder %s856_s6, 0 }
  0x4d   : > { %p859_p8 = scmp.eq.s32.totalorder (!%p858_p2), %s665_s0, 0 }
  0x4e   : > { %134 = sbr.rel (%p858_p2) target bundleno = 145 (0x91), region = 28 }
  0x55   : > { %579 = dma.done.wait (%p859_p8), [#allocation5], 1024   ;;  %p860_p3 = pmov %p859_p8 }
  0x57   : > { %581 = vsyncadd (%p860_p3), [#allocation5], 4294966272  ;;  %p861_p9 = pmov %p860_p3 }
  0x58   : > { %p862_p12 = pmov %p860_p3 }
  0x59   : > { %583 = dma.done.wait (%p861_p9), [#allocation8], 128  }
  0x5a   : > { %585 = vsyncadd (%p862_p12), [#allocation8], 4294967168  ;;  %s152_s9 = sand.u32 1, %s596_s23   ;;  %s766_s11 = sshll.u32 %s665_s0, 7  ;;  %v163_v0 = vld [vmem:[#allocation7] sm:$0x1] }
  0x5b   : > { %s156_s6 = sld [smem:[#allocation3 + %s766_s11]]  ;;  %s341_s18 = sshll.u32 %s152_s9, 3  ;;  %v174_v3 = vld [vmem:[#allocation7 + $0x1] sm:$0x1]  ;;  %v185_v6 = vld [vmem:[#allocation7 + $0x2] sm:$0x1] }
  0x5c   : > { %s166_s19 = sadd.s32 1, %s766_s11  ;;  %s177_s20 = sadd.s32 2, %s766_s11  ;;  %v196_v9 = vld [vmem:[#allocation7 + $0x3] sm:$0x1]  ;;  %v207_v12 = vld [vmem:[#allocation7 + $0x4] sm:$0x1] }
  0x5d   : > { %s167_s21 = sld [smem:[#allocation3 + %s166_s19]]  ;;  %s188_s28 = sadd.s32 3, %s766_s11  ;;  %v218_v15 = vld [vmem:[#allocation7 + $0x5] sm:$0x1]  ;;  %v229_v16 = vld [vmem:[#allocation7 + $0x6] sm:$0x1] }
  0x5e   : > { %s178_s26 = sld [smem:[#allocation3 + %s177_s20]]  ;;  %s199_s29 = sadd.s32 4, %s766_s11  ;;  %v240_v21 = vld [vmem:[#allocation7 + $0x7] sm:$0x1] }
  0x5f   : > { %s775_s7 = sld [smem:[#allocation3 + %s188_s28]]  ;;  %s779_s13 = scalar_lea.vmem [#allocation9], %s341_s18 }
  0x60   : > { %s777_s0 = sld [smem:[#allocation3 + %s199_s29]]  ;;  %s210_s17 = sadd.s32 5, %s766_s11 }
  0x61   : > { %p157_p1 = scmp.gt.s32.totalorder %s156_s6, 0  ;;  %p343_p13 = scmp.lt.s32.totalorder %s156_s6, 63 }
  0x62   : > { %s211_s18 = sld [smem:[#allocation3 + %s210_s17]]  ;;  %s232_s20 = sadd.s32 7, %s766_s11 }
  0x63   : > { %s870_s6 = smov (!%p157_p1, %s156_s6), 0  ;;  %p168_p4 = scmp.gt.s32.totalorder %s167_s21, 0 }
  0x64   : > { %p348_p5 = scmp.lt.s32.totalorder %s167_s21, 63  ;;  %s872_s6 = smov (!%p343_p13, %s870_s6), 63 }
  0x65   : > { %s874_s21 = smov (!%p168_p4, %s167_s21), 0  ;;  %p179_p6 = scmp.gt.s32.totalorder %s178_s26, 0 }
  0x66   : > { %s161_s10 = scalar_lea.vmem [#allocation4], %s872_s6  ;;  %s876_s21 = smov (!%p348_p5, %s874_s21), 63 }
  0x67   : > { %v162_v1 = vld [vmem:[%s161_s10] sm:$0x1]  ;;  %s180_s12 = scalar_select %p179_p6, %s178_s26, 0 }
  0x68   : > { %v164_v2 = vadd.f32 %v163_v0, %v162_v1  ;;  %p353_p7 = scmp.lt.s32.totalorder %s178_s26, 63  ;;  %s172_s14 = scalar_lea.vmem [#allocation4], %s876_s21 }
  0x69   : > { %v173_v4 = vld [vmem:[%s172_s14] sm:$0x1]  ;;  %p190_p10 = scmp.gt.s32.totalorder %s775_s7, 0  ;;  %p358_p11 = scmp.lt.s32.totalorder %s775_s7, 63 }
  0x6a   : > { %165 = vst [vmem:[%s779_s13] sm:$0x1] %v164_v2  ;;  %v175_v5 = vadd.f32 %v174_v3, %v173_v4  ;;  %s878_s12 = smov (!%p353_p7, %s180_s12), 63  ;;  %p201_p0 = scmp.gt.s32.totalorder %s777_s0, 0 }
  0x6b   : > { %s880_s7 = smov (!%p190_p10, %s775_s7), 0  ;;  %s183_s15 = scalar_lea.vmem [#allocation4], %s878_s12 }
  0x6c   : > { %176 = vst [vmem:[%s779_s13 + $0x1] sm:$0x1] %v175_v5  ;;  %v184_v7 = vld [vmem:[%s183_s15] sm:$0x1]  ;;  %s882_s7 = smov (!%p358_p11, %s880_s7), 63  ;;  %p363_p2 = scmp.lt.s32.totalorder %s777_s0, 63 }
  0x6d   : > { %v186_v8 = vadd.f32 %v185_v6, %v184_v7  ;;  %s202_s8 = scalar_select %p201_p0, %s777_s0, 0 }
  0x6e   : > { %s194_s16 = scalar_lea.vmem [#allocation4], %s882_s7  ;;  %s221_s6 = sadd.s32 6, %s766_s11 }
  0x6f   : > { %187 = vst [vmem:[%s779_s13 + $0x2] sm:$0x1] %v186_v8  ;;  %v195_v10 = vld [vmem:[%s194_s16] sm:$0x1]  ;;  %s884_s8 = smov (!%p363_p2, %s202_s8), 63  ;;  %s222_s19 = sld [smem:[#allocation3 + %s221_s6]] }
  0x70   : > { %v197_v11 = vadd.f32 %v196_v9, %v195_v10  ;;  %s205_s21 = scalar_lea.vmem [#allocation4], %s884_s8  ;;  %s233_s26 = sld [smem:[#allocation3 + %s232_s20]] }
  0x71   : > { %v206_v13 = vld [vmem:[%s205_s21] sm:$0x1]  ;;  %p212_p8 = scmp.gt.s32.totalorder %s211_s18, 0  ;;  %p368_p3 = scmp.lt.s32.totalorder %s211_s18, 63 }
  0x72   : > { %198 = vst [vmem:[%s779_s13 + $0x3] sm:$0x1] %v197_v11  ;;  %v208_v14 = vadd.f32 %v207_v12, %v206_v13  ;;  %s257_s7 = sshll.u32 %s779_s13, 4  ;;  %s802_s14 = scalar_lea.hbm %s850_s3, %s766_s11  ;;  %s804_s7 = int_to_ptr.vmem [resolvable:$true] %s257_s7 }
  0x73   : > { %s886_s18 = smov (!%p212_p8, %s211_s18), 0  ;;  %s244_s15 = scalar_lea.sflag [#allocation6], %s152_s9 }
  0x74   : > { %209 = vst [vmem:[%s779_s13 + $0x4] sm:$0x1] %v208_v14  ;;  %s890_s18 = smov (!%p368_p3, %s886_s18), 63  ;;  %s532_s8 = scalar_lea.vmem %s804_s7, 128 }
  0x75   : > { %p223_p9 = scmp.gt.s32.totalorder %s222_s19, 0  ;;  %p373_p12 = scmp.lt.s32.totalorder %s222_s19, 63 }
  0x76   : > { %p234_p1 = scmp.gt.s32.totalorder %s233_s26, 0  ;;  %s216_s28 = scalar_lea.vmem [#allocation4], %s890_s18 }
  0x77   : > { %s888_s19 = smov (!%p223_p9, %s222_s19), 0  ;;  %v217_v17 = vld [vmem:[%s216_s28] sm:$0x1]  ;;  %p378_p13 = scmp.lt.s32.totalorder %s233_s26, 63 }
  0x78   : > { %s892_s19 = smov (!%p373_p12, %s888_s19), 63  ;;  %v219_v18 = vadd.f32 %v218_v15, %v217_v17  ;;  %s894_s26 = smov (!%p234_p1, %s233_s26), 0 }
  0x79   : > { %s227_s29 = scalar_lea.vmem [#allocation4], %s892_s19  ;;  %s896_s26 = smov (!%p378_p13, %s894_s26), 63 }
  0x7a   : > { %v228_v19 = vld [vmem:[%s227_s29] sm:$0x1]  ;;  %220 = vst [vmem:[%s779_s13 + $0x5] sm:$0x1] %v219_v18  ;;  %s238_s0 = scalar_lea.vmem [#allocation4], %s896_s26  ;;  %p533_p4 = scmp.ne.s32.totalorder %s804_s7, %s532_s8 }
  0x7b   : > { %v230_v20 = vadd.f32 %v229_v16, %v228_v19  ;;  %v239_v22 = vld [vmem:[%s238_s0] sm:$0x1]  ;;  %p863_p5 = scmp.ne.s32.totalorder %s854_s4, 0  ;;  %s611_s16 = smov [#allocation9]  }
  0x7c   : > { %v241_v23 = vadd.f32 %v240_v21, %v239_v22  ;;  %s536_s17 = sshll.u32 %s611_s16, 4  ;;  %s537_s17 = int_to_ptr.vmem [resolvable:$false] %s536_s17 }
  0x7d   : > { %231 = vst [vmem:[%s779_s13 + $0x6] sm:$0x1] %v230_v20  ;;  %p534_p6 = pnand %p533_p4, %p863_p5  ;;  %s538_s6 = scalar_lea.vmem %s537_s17, 256 }
  0x7e   : > { %242 = vst [vmem:[%s779_s13 + $0x7] sm:$0x1] %v241_v23  ;;  %p539_p10 = scmp.lt.s32.totalorder %s804_s7, %s537_s17  ;;  %p540_p11 = scmp.lt.s32.totalorder %s538_s6, %s532_s8 }
  0x7f   : > { %p535_p7 = pneg %p534_p6 }
  0x80   : > { %p541_p0 = por %p540_p11, %p539_p10 }
  0x82   : > { %p542_p2 = pnand %p541_p0, %p535_p7 }
  0x84   : > { %545 = shalt.err (!%p542_p2)
}
  0x85   : > { %s546_s9 = scalar_lea.hbm %s802_s14, 128  ;;  %s550_s18 = scalar_lea.hbm %s850_s3, 256 }
  0x86   : > { %p547_p8 = scmp.ne.s32.totalorder %s802_s14, %s546_s9  ;;  %p551_p12 = scmp.lt.u32.totalorder %s802_s14, %s850_s3 }
  0x87   : > { %p552_p1 = scmp.lt.u32.totalorder %s550_s18, %s546_s9  ;;  %p554_p4 = scmp.lt.u32.totalorder %s546_s9, %s802_s14 }
  0x88   : > { %p548_p3 = pnand %p547_p8, %p863_p5 }
  0x89   : > { %p553_p13 = por %p552_p1, %p551_p12 }
  0x8a   : > { %p549_p9 = pneg %p548_p3 }
  0x8b   : > { %p555_p6 = por %p554_p4, %p553_p13 }
  0x8d   : > { %p556_p7 = pnand %p555_p6, %p549_p9 }
  0x8f   : > { %559 = shalt.err (!%p556_p7)
}
  0x90   : > { %411 = dma.vmem_to_hbm [thread:$0]  (%p863_p5), %s804_s7, 128, %s802_s14, %s244_s15  }
  0x91 PF: > { %p428_p10 = scmp.ge.s32.totalorder %s604_s25, 2  ;;  %s269_s21 = sand.u32 1, %s592_s22  }
  0x92   : > { %p864_p11 = scmp.ne.s32.totalorder %s855_s5, 0  ;;  %s270_s26 = scalar_lea.sflag [#allocation6], %s269_s21 }
  0x94   : > { %p421_p0 = pnand %p428_p10, %p864_p11 }
  0x96   : > { %587 = dma.done.wait (!%p421_p0), %s270_s26, 128  }
  0x97   : > { %589 = vsyncadd (!%p421_p0), %s270_s26, 4294967168  ;;  %p19_p2 = scmp.ge.s32.totalorder %s669_s27, 4   ;;  %s865_s22 = smov %s596_s23 }
  0x98   : > { %s866_s23 = smov %s600_s24  ;;  %s867_s24 = smov %s680_s30 }
  0x99   : > { %s868_s25 = smov %s669_s27  ;;  %21 = sbr.rel (!%p19_p2) target bundleno = 17 (0x11), region = 77 }
  0xa0   :  { %275 = vsyncpa [#allocation5], 1 }
  0xa1   :  { %277 = vsyncpa [#allocation5 + $0x1], 1 }
  0xa2   :  { %278 = vsyncpa [#allocation8], 1 }
  0xa3   :  { %279 = vsyncpa [#allocation6], 1 }
  0xa4   :  { %281 = vsyncpa [#allocation6 + $0x1], 1 }

</bundles_post_ra>
